<compile_context>
chip_gen: v5e
topology: v5e:2x2
jax: 0.10.0
libtpu: 0.0.40
codegen_flags: <defaults>
</compile_context>

<pallas_src>
import functools

import jax
import jax.numpy as jnp
from jax import lax
from jax.experimental import pallas as pl
from jax.experimental.pallas import tpu as pltpu


def _round_up(x, m):
    return -(-x // m) * m


def _lane_fold(x):
    """Fold (C, W) -> (C, 128) with VALU adds only (W = 128 * 2**m)."""
    w = x.shape[-1]
    while w > 128:
        w //= 2
        x = x[:, :w] + x[:, w:2 * w]
    return x


def _f1_count_kernel(pred_ref, tgt_ref, out_ref, *, C, chunk, k_chunks, has_pad):
    """Accumulates (3, C, 128) partial counts [tp, tot_pred, tot_tgt]."""
    t = pl.program_id(2)

    @pl.when(t == 0)
    def _():
        out_ref[...] = jnp.zeros_like(out_ref)

    cids = lax.broadcasted_iota(jnp.int32, (C, chunk), 0)   # class id per row

    def body(j, carry):
        tp_acc, tot_p_acc, tot_t_acc = carry
        off = pl.multiple_of(j * chunk, chunk)
        p = pred_ref[:, pl.ds(off, chunk)]                   # (C, chunk) logits
        tg = tgt_ref[:, pl.ds(off, chunk)]                   # (1, chunk) int32

        maxv = jnp.max(p, axis=0, keepdims=True)             # (1, chunk)
        if has_pad:
            # Padded / duplicated lanes carry target == C (wrapper pad value).
            # Poisoning maxv with NaN makes is_max all-false there, so the
            # predicted one-hot is all-zero and tot_p is not polluted by
            # out-of-bounds or duplicated predict lanes.
            maxv = jnp.where(tg < C, maxv, jnp.array(jnp.nan, maxv.dtype))
        is_max = p == maxv
        # first-max tie-break (matches torch.max + scatter_)
        amax = jnp.min(jnp.where(is_max, cids, C), axis=0, keepdims=True)
        pred_f = (cids == amax).astype(jnp.float32)          # (C, chunk)
        tgt_f = (cids == tg).astype(jnp.float32)             # pad lanes -> 0
        tp_f = pred_f * tgt_f

        return (tp_acc + _lane_fold(tp_f),
                tot_p_acc + _lane_fold(pred_f),
                tot_t_acc + _lane_fold(tgt_f))

    init = (out_ref[0], out_ref[1], out_ref[2])
    tp_acc, tot_p_acc, tot_t_acc = lax.fori_loop(
        0, k_chunks, body, init, unroll=min(k_chunks, 4))
    out_ref[0] = tp_acc
    out_ref[1] = tot_p_acc
    out_ref[2] = tot_t_acc


def _vmem_capacity_bytes():
    try:
        info = pltpu.get_tpu_info()
        cap = getattr(info, "vmem_capacity_bytes", None)
        if cap:
            return int(cap)
    except Exception:
        pass
    return 64 * 2**20   # conservative fallback (v7x-sized)


def _auto_spatial_tile(S, C, itemsize, vmem_cap):
    big = vmem_cap >= 100 * 2**20
    budget = (16 if big else 6) * 2**20          # bytes per predict buffer
    ts = max(128, (budget // max(C * itemsize, 1)) // 128 * 128)
    return int(min(ts, _round_up(S, 128)))


def _pick_chunk(ts, C):
    """Largest 128*2**m <= ~16 vregs of (C, chunk) that divides ts."""
    sub_vregs = -(-C // 8)                        # vregs per 128-lane column
    max_chunk = 128 * max(1, min(8, 16 // sub_vregs))
    c = 128
    while c * 2 <= min(ts, max_chunk) and ts % (c * 2) == 0:
        c *= 2
    return c


def f1_loss_pallas(predict, target, *, rp_weight=(1.0, 1.0), class_weight=None,
                   loss_weight=1.0, smooth=1e-6, reduction='mean',
                   spatial_tile=None, spatial_chunks=None):
    """Matches F1Loss.forward with weight=None, avg_factor=None."""
    N, C, H, W = predict.shape
    S = H * W
    isz = predict.dtype.itemsize
    pred = predict.reshape(N, C, S)               # keep native dtype
    tgt = target.reshape(N, 1, S)
    if tgt.dtype != jnp.int32:
        tgt = tgt.astype(jnp.int32)

    vmem_cap = _vmem_capacity_bytes()
    if spatial_tile is None:
        ts = _auto_spatial_tile(S, C, isz, vmem_cap)
    else:
        ts = _round_up(min(int(spatial_tile), _round_up(S, 128)), 128)

    ns_real = pl.cdiv(S, ts)
    if spatial_chunks is not None:
        nc = max(1, min(int(spatial_chunks), ns_real))
    else:
        # spatial "parallel" split (feeds v7x's 2nd TC at N=1); only when the
        # split is clean or cheap so 1-TC chips waste at most 1/8 of the tiles.
        nc = 2 if (ns_real >= 2 and (ns_real % 2 == 0 or ns_real >= 8)) else 1
    nt = -(-ns_real // nc)
    ns_pad = nc * nt
    s_pad = ns_pad * ts
    has_pad = (s_pad != S)

    if has_pad:
        # pad with the invalid class id C so padded lanes self-mask in-kernel.
        tgt = jnp.pad(tgt, ((0, 0), (0, 0), (0, s_pad - S)), constant_values=C)

    chunk = _pick_chunk(ts, C)
    k_chunks = ts // chunk

    # index maps (predict is NOT padded; duplicate/ragged tiles clamp to the
    # last real block, their contribution is zero because target there is pad).
    if ns_pad == ns_real:
        pred_map = lambda n, c, t: (n, 0, c * nt + t)
    else:
        last = ns_real - 1
        pred_map = lambda n, c, t: (n, 0, jnp.minimum(c * nt + t, last))
    tgt_map = lambda n, c, t: (n, 0, c * nt + t)
    out_map = lambda n, c, t: (n, c, 0, 0, 0)

    kernel = functools.partial(
        _f1_count_kernel, C=C, chunk=chunk, k_chunks=k_chunks, has_pad=has_pad)

    tile_bytes = C * ts * isz + ts * 4            # one predict + one target buf
    cap = (100 << 20) if vmem_cap >= 100 * 2**20 else (48 << 20)
    vmem_limit = int(min(cap, max(32 << 20, 2 * tile_bytes + (8 << 20))))

    counts = pl.pallas_call(
        kernel,
        out_shape=jax.ShapeDtypeStruct((N, nc, 3, C, 128), jnp.float32),
        grid_spec=pltpu.PrefetchScalarGridSpec(
            num_scalar_prefetch=0,
            grid=(N, nc, nt),
            in_specs=[
                pl.BlockSpec((None, C, ts), pred_map),   # predict logits
                pl.BlockSpec((None, 1, ts), tgt_map),    # target (padded)
            ],
            out_specs=pl.BlockSpec((None, None, 3, C, 128), out_map),
        ),
        compiler_params=pltpu.CompilerParams(
            dimension_semantics=("parallel", "parallel", "arbitrary"),
            vmem_limit_bytes=vmem_limit),
    )(pred, tgt)

    # tiny post-processing in the wrapper: (N, nc, 3, C, 128) -> (N, 3, C)
    counts = counts.sum(axis=(1, 4))
    tp = counts[:, 0]
    tot_p = counts[:, 1]
    tot_t = counts[:, 2]

    recall = float(rp_weight[0]) * (tp + smooth) / (tot_t + smooth)
    precision = float(rp_weight[1]) * (tp + smooth) / (tot_p + smooth)
    cls_loss = 2.0 * recall * precision / (recall + precision)      # (N, C)
    if class_weight is not None:
        cls_loss = cls_loss * jnp.asarray(class_weight, jnp.float32)[None, :]

    if reduction == 'mean':
        red = jnp.mean(cls_loss)
    elif reduction == 'sum':
        red = jnp.sum(cls_loss)
    else:  # 'none'
        red = cls_loss
    return loss_weight * (1.0 - red)


def f1_loss_ref(predict, target, *, rp_weight=(1.0, 1.0), class_weight=None,
                loss_weight=1.0, smooth=1e-6, reduction='mean'):
    """Pure-JAX reference mirroring the PyTorch forward."""
    N, C, H, W = predict.shape
    amax = jnp.argmax(predict, axis=1)
    pred_oh = jax.nn.one_hot(amax, C, axis=1, dtype=jnp.float32)
    tgt_oh = jax.nn.one_hot(target, C, axis=1, dtype=jnp.float32)
    tp = jnp.sum(pred_oh * tgt_oh, axis=(2, 3))
    tot_t = jnp.sum(tgt_oh, axis=(2, 3))
    tot_p = jnp.sum(pred_oh, axis=(2, 3))
    recall = rp_weight[0] * (tp + smooth) / (tot_t + smooth)
    precision = rp_weight[1] * (tp + smooth) / (tot_p + smooth)
    cls_loss = 2 * recall * precision / (recall + precision)
    if class_weight is not None:
        cls_loss = cls_loss * jnp.asarray(class_weight, jnp.float32)
    if reduction == 'mean':
        red = jnp.mean(cls_loss)
    elif reduction == 'sum':
        red = jnp.sum(cls_loss)
    else:
        red = cls_loss
    return loss_weight * (1.0 - red)


if __name__ == "__main__":
    key = jax.random.PRNGKey(0)
    k1, k2, k3, k4, k5, k6, k7, k8 = jax.random.split(key, 8)

    # Case 1: small shape, single tile, no padding (S = 256 = TS).
    N, C, H, W = 2, 4, 16, 16
    predict = jax.random.normal(k1, (N, C, H, W), dtype=jnp.float32)
    target = jax.random.randint(k2, (N, H, W), 0, C, dtype=jnp.int32)
    loss = f1_loss_pallas(predict, target)
    jax.block_until_ready(loss)
    ref = f1_loss_ref(predict, target)
    assert jnp.allclose(loss, ref, atol=1e-5), (loss, ref)

    # Case 2: multi-tile + clean spatial parallel split + masked tail
    # (S=400, TS=128 -> 4 tiles, 2 chunks x 2 tiles) + class_weight.
    N2, C2, H2, W2 = 2, 4, 20, 20
    predict2 = jax.random.normal(k3, (N2, C2, H2, W2), dtype=jnp.float32)
    target2 = jax.random.randint(k4, (N2, H2, W2), 0, C2, dtype=jnp.int32)
    cw = [0.5, 1.0, 1.5, 2.0]
    loss2 = f1_loss_pallas(predict2, target2, class_weight=cw, spatial_tile=128)
    jax.block_until_ready(loss2)
    ref2 = f1_loss_ref(predict2, target2, class_weight=cw)
    assert jnp.allclose(loss2, ref2, atol=1e-5), (loss2, ref2)

    # Case 3: ragged spatial split (3 real tiles over 2 chunks -> one clamped
    # duplicate tile), odd class count, non-default rp_weight, 'sum' reduction.
    N3, C3, H3, W3 = 1, 5, 16, 24
    predict3 = jax.random.normal(k5, (N3, C3, H3, W3), dtype=jnp.float32)
    target3 = jax.random.randint(k6, (N3, H3, W3), 0, C3, dtype=jnp.int32)
    loss3 = f1_loss_pallas(predict3, target3, rp_weight=(2.0, 0.5),
                           reduction='sum', spatial_tile=128, spatial_chunks=2)
    jax.block_until_ready(loss3)
    ref3 = f1_loss_ref(predict3, target3, rp_weight=(2.0, 0.5), reduction='sum')
    assert jnp.allclose(loss3, ref3, atol=1e-5), (loss3, ref3)

    # Case 4: auto tile larger than S (single oversized partial block,
    # S=400 < TS=512) with 'none' reduction.
    N4, C4, H4, W4 = 1, 4, 20, 20
    predict4 = jax.random.normal(k7, (N4, C4, H4, W4), dtype=jnp.float32)
    target4 = jax.random.randint(k8, (N4, H4, W4), 0, C4, dtype=jnp.int32)
    loss4 = f1_loss_pallas(predict4, target4, reduction='none',
                           loss_weight=0.5)
    jax.block_until_ready(loss4)
    ref4 = f1_loss_ref(predict4, target4, reduction='none', loss_weight=0.5)
    assert jnp.allclose(loss4, ref4, atol=1e-5), (loss4, ref4)

    print("KERNEL_OK")
</pallas_src>

<mosaic_0001>
module attributes {stable_mosaic.version = 11 : i64} {
  func.func @_f1_count_kernel(%arg0: i32, %arg1: i32, %arg2: i32, %arg3: memref<1x4x256xf32, #tpu.memory_space<vmem>>, %arg4: memref<1x1x256xi32, #tpu.memory_space<vmem>>, %arg5: memref<1x1x3x4x128xf32, #tpu.memory_space<vmem>>) attributes {dimension_semantics = [#tpu.dimension_semantics<parallel>, #tpu.dimension_semantics<parallel>, #tpu.dimension_semantics<arbitrary>], iteration_bounds = array<i64: 2, 1, 1>, scalar_prefetch = 0 : i64, scratch_operands = 0 : i64, tpu.core_type = #tpu.core_type<tc>, window_params = [{transform_indices = @transform_0, window_bounds = array<i64: 1, 4, 256>}, {transform_indices = @transform_1, window_bounds = array<i64: 1, 1, 256>}, {transform_indices = @transform_2, window_bounds = array<i64: 1, 1, 3, 4, 128>}]} {
    %c0_i32 = arith.constant 0 : i32
    %0 = arith.cmpi eq, %arg2, %c0_i32 : i32
    %1 = arith.extui %0 : i1 to i32
    %c0_i32_0 = arith.constant 0 : i32
    %2 = arith.cmpi ne, %1, %c0_i32_0 : i32
    scf.if %2 {
      %cst_34 = arith.constant 0.000000e+00 : f32
      %56 = vector.broadcast %cst_34 : f32 to vector<3x4x128xf32>
      %c0_35 = arith.constant 0 : index
      %c0_36 = arith.constant 0 : index
      %c0_37 = arith.constant 0 : index
      %c0_38 = arith.constant 0 : index
      %c0_39 = arith.constant 0 : index
      %57 = vector.load %arg5[%c0_35, %c0_36, %c0_37, %c0_38, %c0_39] : memref<1x1x3x4x128xf32, #tpu.memory_space<vmem>>, vector<1x1x3x4x128xf32>
      %58 = vector.shape_cast %57 : vector<1x1x3x4x128xf32> to vector<3x4x128xf32>
      %59 = vector.shape_cast %56 : vector<3x4x128xf32> to vector<1x1x3x4x128xf32>
      tpu.vector_store %arg5[%c0_35, %c0_36, %c0_37, %c0_38, %c0_39], %59 {strides = array<i32>} : memref<1x1x3x4x128xf32, #tpu.memory_space<vmem>>, vector<1x1x3x4x128xf32>,
    } else {
    }
    %3 = tpu.iota {dimensions = array<i32: 0>} : vector<4x256xi32>
    %c0 = arith.constant 0 : index
    %c0_1 = arith.constant 0 : index
    %c0_2 = arith.constant 0 : index
    %c0_3 = arith.constant 0 : index
    %c0_4 = arith.constant 0 : index
    %4 = vector.load %arg5[%c0, %c0_1, %c0_2, %c0_3, %c0_4] : memref<1x1x3x4x128xf32, #tpu.memory_space<vmem>>, vector<1x1x1x4x128xf32>
    %5 = vector.shape_cast %4 : vector<1x1x1x4x128xf32> to vector<4x128xf32>
    %c0_5 = arith.constant 0 : index
    %c0_6 = arith.constant 0 : index
    %c1 = arith.constant 1 : index
    %c0_7 = arith.constant 0 : index
    %c0_8 = arith.constant 0 : index
    %6 = vector.load %arg5[%c0_5, %c0_6, %c1, %c0_7, %c0_8] : memref<1x1x3x4x128xf32, #tpu.memory_space<vmem>>, vector<1x1x1x4x128xf32>
    %7 = vector.shape_cast %6 : vector<1x1x1x4x128xf32> to vector<4x128xf32>
    %c0_9 = arith.constant 0 : index
    %c0_10 = arith.constant 0 : index
    %c2 = arith.constant 2 : index
    %c0_11 = arith.constant 0 : index
    %c0_12 = arith.constant 0 : index
    %8 = vector.load %arg5[%c0_9, %c0_10, %c2, %c0_11, %c0_12] : memref<1x1x3x4x128xf32, #tpu.memory_space<vmem>>, vector<1x1x1x4x128xf32>
    %9 = vector.shape_cast %8 : vector<1x1x1x4x128xf32> to vector<4x128xf32>
    %c0_i32_13 = arith.constant 0 : i32
    %c256_i32 = arith.constant 256 : i32
    %10 = arith.muli %c0_i32_13, %c256_i32 : i32
    %11 = tpu.assume_multiple %10, 256 : i32
    %c0_14 = arith.constant 0 : index
    %c0_15 = arith.constant 0 : index
    %12 = arith.index_cast %11 : i32 to index
    %13 = vector.load %arg3[%c0_14, %c0_15, %12] : memref<1x4x256xf32, #tpu.memory_space<vmem>>, vector<1x4x256xf32>
    %14 = vector.shape_cast %13 : vector<1x4x256xf32> to vector<4x256xf32>
    %c0_16 = arith.constant 0 : index
    %c0_17 = arith.constant 0 : index
    %15 = arith.index_cast %11 : i32 to index
    %16 = vector.load %arg4[%c0_16, %c0_17, %15] : memref<1x1x256xi32, #tpu.memory_space<vmem>>, vector<1x1x256xi32>
    %17 = vector.shape_cast %16 : vector<1x1x256xi32> to vector<1x256xi32>
    %cst = arith.constant dense<0xFF800000> : vector<256xf32>
    %18 = vector.multi_reduction <maximumf>, %14, %cst [0] : vector<4x256xf32> to vector<256xf32>
    %19 = vector.shape_cast %18 : vector<256xf32> to vector<1x256xf32>
    %20 = vector.broadcast %19 : vector<1x256xf32> to vector<4x256xf32>
    %21 = arith.cmpf oeq, %14, %20 : vector<4x256xf32>
    %c4_i32 = arith.constant 4 : i32
    %22 = vector.broadcast %c4_i32 : i32 to vector<4x256xi32>
    %23 = arith.select %21, %3, %22 : vector<4x256xi1>, vector<4x256xi32>
    %cst_18 = arith.constant dense<2147483647> : vector<256xi32>
    %24 = vector.multi_reduction <minsi>, %23, %cst_18 [0] : vector<4x256xi32> to vector<256xi32>
    %25 = vector.shape_cast %24 : vector<256xi32> to vector<1x256xi32>
    %26 = vector.broadcast %25 : vector<1x256xi32> to vector<4x256xi32>
    %27 = arith.cmpi eq, %3, %26 : vector<4x256xi32>
    %28 = arith.extui %27 : vector<4x256xi1> to vector<4x256xi32>
    %29 = arith.sitofp %28 : vector<4x256xi32> to vector<4x256xf32>
    %30 = vector.broadcast %17 : vector<1x256xi32> to vector<4x256xi32>
    %31 = arith.cmpi eq, %3, %30 : vector<4x256xi32>
    %32 = arith.extui %31 : vector<4x256xi1> to vector<4x256xi32>
    %33 = arith.sitofp %32 : vector<4x256xi32> to vector<4x256xf32>
    %34 = arith.mulf %29, %33 : vector<4x256xf32>
    %35 = vector.extract_strided_slice %34 {offsets = [0, 0], sizes = [4, 128], strides = [1, 1]} : vector<4x256xf32> to vector<4x128xf32>
    %36 = vector.extract_strided_slice %34 {offsets = [0, 128], sizes = [4, 128], strides = [1, 1]} : vector<4x256xf32> to vector<4x128xf32>
    %37 = arith.addf %35, %36 : vector<4x128xf32>
    %38 = arith.addf %5, %37 : vector<4x128xf32>
    %39 = vector.extract_strided_slice %29 {offsets = [0, 0], sizes = [4, 128], strides = [1, 1]} : vector<4x256xf32> to vector<4x128xf32>
    %40 = vector.extract_strided_slice %29 {offsets = [0, 128], sizes = [4, 128], strides = [1, 1]} : vector<4x256xf32> to vector<4x128xf32>
    %41 = arith.addf %39, %40 : vector<4x128xf32>
    %42 = arith.addf %7, %41 : vector<4x128xf32>
    %43 = vector.extract_strided_slice %33 {offsets = [0, 0], sizes = [4, 128], strides = [1, 1]} : vector<4x256xf32> to vector<4x128xf32>
    %44 = vector.extract_strided_slice %33 {offsets = [0, 128], sizes = [4, 128], strides = [1, 1]} : vector<4x256xf32> to vector<4x128xf32>
    %45 = arith.addf %43, %44 : vector<4x128xf32>
    %46 = arith.addf %9, %45 : vector<4x128xf32>
    %c1_i32 = arith.constant 1 : i32
    %c0_19 = arith.constant 0 : index
    %c0_20 = arith.constant 0 : index
    %c0_21 = arith.constant 0 : index
    %c0_22 = arith.constant 0 : index
    %c0_23 = arith.constant 0 : index
    %47 = vector.load %arg5[%c0_19, %c0_20, %c0_21, %c0_22, %c0_23] : memref<1x1x3x4x128xf32, #tpu.memory_space<vmem>>, vector<1x1x1x4x128xf32>
    %48 = vector.shape_cast %47 : vector<1x1x1x4x128xf32> to vector<4x128xf32>
    %49 = vector.shape_cast %38 : vector<4x128xf32> to vector<1x1x1x4x128xf32>
    tpu.vector_store %arg5[%c0_19, %c0_20, %c0_21, %c0_22, %c0_23], %49 {strides = array<i32>} : memref<1x1x3x4x128xf32, #tpu.memory_space<vmem>>, vector<1x1x1x4x128xf32>,
    %c0_24 = arith.constant 0 : index
    %c0_25 = arith.constant 0 : index
    %c1_26 = arith.constant 1 : index
    %c0_27 = arith.constant 0 : index
    %c0_28 = arith.constant 0 : index
    %50 = vector.load %arg5[%c0_24, %c0_25, %c1_26, %c0_27, %c0_28] : memref<1x1x3x4x128xf32, #tpu.memory_space<vmem>>, vector<1x1x1x4x128xf32>
    %51 = vector.shape_cast %50 : vector<1x1x1x4x128xf32> to vector<4x128xf32>
    %52 = vector.shape_cast %42 : vector<4x128xf32> to vector<1x1x1x4x128xf32>
    tpu.vector_store %arg5[%c0_24, %c0_25, %c1_26, %c0_27, %c0_28], %52 {strides = array<i32>} : memref<1x1x3x4x128xf32, #tpu.memory_space<vmem>>, vector<1x1x1x4x128xf32>,
    %c0_29 = arith.constant 0 : index
    %c0_30 = arith.constant 0 : index
    %c2_31 = arith.constant 2 : index
    %c0_32 = arith.constant 0 : index
    %c0_33 = arith.constant 0 : index
    %53 = vector.load %arg5[%c0_29, %c0_30, %c2_31, %c0_32, %c0_33] : memref<1x1x3x4x128xf32, #tpu.memory_space<vmem>>, vector<1x1x1x4x128xf32>
    %54 = vector.shape_cast %53 : vector<1x1x1x4x128xf32> to vector<4x128xf32>
    %55 = vector.shape_cast %46 : vector<4x128xf32> to vector<1x1x1x4x128xf32>
    tpu.vector_store %arg5[%c0_29, %c0_30, %c2_31, %c0_32, %c0_33], %55 {strides = array<i32>} : memref<1x1x3x4x128xf32, #tpu.memory_space<vmem>>, vector<1x1x1x4x128xf32>,
    return
  }
  func.func @transform_0(%arg0: i32, %arg1: i32, %arg2: i32) -> (i32, i32, i32) {
    %c1_i32 = arith.constant 1 : i32
    %0 = arith.muli %arg1, %c1_i32 : i32
    %1 = arith.addi %0, %arg2 : i32
    %c0_i32 = arith.constant 0 : i32
    %c0_i32_0 = arith.constant 0 : i32
    return %arg0, %c0_i32, %1 : i32, i32, i32
  }
  func.func @transform_1(%arg0: i32, %arg1: i32, %arg2: i32) -> (i32, i32, i32) {
    %c1_i32 = arith.constant 1 : i32
    %0 = arith.muli %arg1, %c1_i32 : i32
    %1 = arith.addi %0, %arg2 : i32
    %c0_i32 = arith.constant 0 : i32
    %c0_i32_0 = arith.constant 0 : i32
    return %arg0, %c0_i32, %1 : i32, i32, i32
  }
  func.func @transform_2(%arg0: i32, %arg1: i32, %arg2: i32) -> (i32, i32, i32, i32, i32) {
    %c0_i32 = arith.constant 0 : i32
    %c0_i32_0 = arith.constant 0 : i32
    %c0_i32_1 = arith.constant 0 : i32
    %c0_i32_2 = arith.constant 0 : i32
    return %arg0, %arg1, %c0_i32, %c0_i32_0, %c0_i32_1 : i32, i32, i32, i32, i32
  }
}

</mosaic_0001>

<bundles_post_ra>
// kernel: tpu_custom_call.1
= control target key start
LH: loop header
LB: loop body
LE: loop exit
PB: predicated region body
PF: predicated region fallthrough
CT: control target
= control target key end

     0   :  { %7 = vsyncpa [#allocation3], 0  ;;  %s898_s0 = inlined_call_operand.hbm [shape: f32[2,4,256], index: 0, kind: input, shape index: {}]   ;;  %s899_s1 = inlined_call_operand.hbm [shape: s32[2,1,256], index: 1, kind: input, shape index: {}]   ;;  %s900_s2 = inlined_call_operand.hbm [shape: f32[2,1,3,4,128], index: 2, kind: output, shape index: {}]  }
   0x1   :  { %9 = vsyncpa [#allocation3 + $0x1], 0 }
   0x2   :  { %10 = vsyncpa [#allocation6], 0 }
   0x3   :  { %12 = vsyncpa [#allocation6 + $0x1], 0 }
   0x4   :  { %13 = vsyncpa [#allocation4], 0 }
   0x5   :  { %15 = vsyncpa [#allocation4 + $0x1], 0  ;;  %s735_s9 = smov 0   ;;  %s737_s10 = smov 0  }
   0x6   :  { %s739_s11 = smov 0   ;;  %s741_s12 = smov 0  }
   0x7   :  { %s743_s13 = smov 0   ;;  %s745_s14 = smov 0  }
   0x8 LB: > { %s471_s15 = sadd.s32 4294967295, %s714_s14   ;;  %s472_s16 = sadd.s32 4294967294, %s714_s14   ;;  %s714_s14 = sphi %s745_s14, %s21_s14   ;;  %s710_s13 = sphi %s743_s13, %s910_s13   ;;  %s706_s12 = sphi %s741_s12, %s909_s12   ;;  %s702_s11 = sphi %s739_s11, %s908_s11   ;;  %s698_s10 = sphi %s737_s10, %s907_s10   ;;  %s694_s9 = sphi %s735_s9, %s906_s9  }
   0x9   : > { %s40_s17 = sadd.s32 1, %s710_s13  ;;  %s51_s18 = sadd.s32 1, %s702_s11 }
   0xa   : > { %p42_p0 = scmp.ge.s32.totalorder %s40_s17, 2  ;;  %p58_p1 = scmp.ne.s32.totalorder %s702_s11, %s698_s10 }
   0xb   : > { %p59_p2 = scmp.eq.s32.totalorder %s714_s14, 0  ;;  %p64_p3 = scmp.ne.s32.totalorder %s698_s10, %s694_s9 }
   0xc   : > { %s912_s17 = smov (%p42_p0, %s40_s17), 0  ;;  %p65_p5 = scmp.eq.s32.totalorder %s471_s15, 0 }
   0xd   : > { %p776_p4 = por %p59_p2, %p58_p1  ;;  %s46_s20 = ssub.s32 %s710_s13, %s912_s17 }
   0xe   : > { %p120_p6 = scmp.eq.s32.totalorder %s471_s15, 1  ;;  %p49_p7 = scmp.eq.s32.totalorder %s46_s20, 0 }
   0xf   : > { %p782_p8 = por %p65_p5, %p64_p3  ;;  %p126_p10 = scmp.eq.s32.totalorder %s472_s16, 1 }
  0x10   : > { %p786_p9 = por %p120_p6, %p58_p1  ;;  %p474_p12 = scmp.ge.s32.totalorder %s714_s14, 2 }
  0x11   : > { %s791_s23 = scalar_select %p49_p7, %s702_s11, %s51_s18  }
  0x12   : > { %p793_p11 = por %p126_p10, %p64_p3  ;;  %p514_p13 = scmp.lt.s32.totalorder %s714_s14, 2 }
  0x13   : > { %s146_s25 = sand.u32 1, %s702_s11   ;;  %s494_s27 = sshll.u32 %s710_s13, 3 }
  0x14   : > { %s475_s26 = sshll.u32 %s146_s25, 3  ;;  %s158_s30 = scalar_lea.hbm %s898_s0, %s494_s27 }
  0x15   : > { %s150_s3 = scalar_lea.vmem [#allocation2], %s475_s26  ;;  %s160_s5 = sshll.u32 %s158_s30, 4  ;;  %s161_s5 = int_to_ptr.hbm [resolvable:$true] %s160_s5 }
  0x16   : > { %s162_s4 = sshll.u32 %s150_s3, 4  ;;  %p806_p0 = pnand %p514_p13, %p776_p4  ;;  %s163_s4 = int_to_ptr.vmem [resolvable:$true] %s162_s4 }
  0x17   : > { %p480_p1 = scmp.ge.s32.totalorder %s714_s14, 1  ;;  %p189_p2 = scmp.lt.s32.totalorder %s714_s14, 3 }
  0x18   : > { %s147_s7 = scalar_lea.sflag [#allocation3], %s146_s25  ;;  %s478_s8 = sshll.u32 %s146_s25, 1 }
  0x19   : > { %506 = dma.hbm_to_vmem [thread:$0]  (!%p806_p0), %s161_s5, 128, %s163_s4, %s147_s7  }
  0x1a   : > { %p190_p3 = pnand %p480_p1, %p189_p2  ;;  %s479_s15 = sshll.u32 %s710_s13, 1 }
  0x1b   : > { %s180_s20 = scalar_lea.hbm %s899_s1, %s479_s15  ;;  %s173_s26 = scalar_lea.vmem [#allocation5], %s478_s8 }
  0x1c   : > { %s184_s19 = sshll.u32 %s173_s26, 4  ;;  %s182_s27 = sshll.u32 %s180_s20, 4  ;;  %s185_s19 = int_to_ptr.vmem [resolvable:$true] %s184_s19  ;;  %s183_s27 = int_to_ptr.hbm [resolvable:$true] %s182_s27 }
  0x1d   : > { %s170_s28 = scalar_lea.sflag [#allocation6], %s146_s25  ;;  %193 = sbr.rel (%p190_p3) target bundleno = 98 (0x62), region = 28 }
  0x1e   : > { %509 = dma.hbm_to_vmem [thread:$0]  (!%p806_p0), %s183_s27, 32, %s185_s19, %s170_s28  }
  0x1f   : > { %s821_s29 = sand.u32 (!%p190_p3), 1, %s698_s10  }
  0x20   : > { %s481_s30 = sshll.u32 (!%p190_p3), %s821_s29, 3  ;;  %s196_s3 = scalar_lea.sflag (!%p190_p3), [#allocation3], %s821_s29 }
  0x21   : > { %s199_s4 = scalar_lea.vmem (!%p190_p3), [#allocation2], %s481_s30 }
  0x22   : > { %681 = dma.done.wait (%p782_p8), %s196_s3, 128  }
  0x23   : > { %683 = vsyncadd (%p782_p8), %s196_s3, 4294967168  ;;  %s482_s25 = sshll.u32 %s821_s29, 1  ;;  %s206_s5 = scalar_lea.sflag [#allocation6], %s821_s29 }
  0x24   : > { %s209_s6 = scalar_lea.vmem [#allocation5], %s482_s25 }
  0x25   : > { %685 = dma.done.wait (%p782_p8), %s206_s5, 32  }
  0x26   : > { %687 = vsyncadd (%p782_p8), %s206_s5, 4294967264  ;;  %s495_s7 = smul.u32 12, %s821_s29  ;;  %v716_v0 = vmov 0.0   ;;  %v254_v1 = vld [vmem:[%s199_s4] sm:$0xff]  ;;  %vm262_vm0 = vcmask 1043456   ;;  %v247_v4 = vlaneseq  ;;  %s337_s26 = scalar_lea.sflag [#allocation4], %s821_s29 }
  0x27   : > { %257 = vst [vmem:[#allocation1] ss:$2 sm:$0xff] %v254_v1  ;;  %v717_v12 = vmov 839922192   ;;  %v255_v14 = vld [vmem:[%s209_s6] sm:$0x3] }
  0x28   : > { %s836_s8 = scalar_lea.vmem [#allocation7], %s495_s7  ;;  %v248_v11 = vshrl.u32 %v247_v4, 7  ;;  %v284_v13 = vunpack.c.l.s4 %v717_v12  ;;  %v317_v17 = vperm.slane %v255_v14, 0  ;;  %v318_v18 = vperm.slane %v255_v14, 1  ;;  %s496_s21 = smul.u32 12, %s706_s12 }
  0x29   : > { %245 = vst [vmem:[%s836_s8 + $0x4] sm:$0xf] %v716_v0  ;;  %s351_s12 = sshll.u32 %s836_s8, 4  ;;  %s648_s3 = scalar_lea.hbm %s900_s2, 24  ;;  %s352_s12 = int_to_ptr.vmem [resolvable:$true] %s351_s12 }
  0x2a   : > { %244 = vst [vmem:[%s836_s8] sm:$0xf] %v716_v0  ;;  %vm319_vm1 = vcmp.eq.s32.totalorder %v248_v11, %v317_v17  ;;  %vm320_vm2 = vcmp.eq.s32.totalorder %v248_v11, %v318_v18  ;;  %v285_v23 = vunpack.c.0.s8 %v284_v13  ;;  %s350_s18 = scalar_lea.hbm %s900_s2, %s496_s21 }
  0x2b   : > { %246 = vst [vmem:[%s836_s8 + $0x8] sm:$0xf] %v716_v0  ;;  %v487_v24 = vsel %vm319_vm1, 1.0, %v716_v0  ;;  %v488_v25 = vsel %vm320_vm2, 1.0, %v716_v0  ;;  %s353_s20 = sshll.u32 %s350_s18, 4  ;;  %s354_s20 = int_to_ptr.hbm [resolvable:$true] %s353_s20 }
  0x2c   : > { %v331_v27 = vadd.f32 %v488_v25, %v487_v24  ;;  %v286_v31 = vperm.slane %v248_v11, %v285_v23  ;;  %s642_s19 = sshra.s32 %s354_s20, 4  ;;  %s643_s19 = int_to_ptr.hbm [resolvable:$true] %s642_s19 }
  0x2d   : > { %s644_s27 = scalar_lea.hbm %s643_s19, 12  ;;  %p649_p7 = scmp.lt.s32.totalorder %s643_s19, %s900_s2 }
  0x2e   : > { %v258_v2 = vld.sshfl [vmem:[#allocation1] sm:$0xff pattern:$0x75316420]  ;;  %v259_v3 = vld.sshfl [vmem:[#allocation1 + $0x8] sm:$0xff pattern:$0x75316420]  ;;  %p645_p4 = scmp.ne.s32.totalorder %s643_s19, %s644_s27  ;;  %p650_p8 = scmp.lt.s32.totalorder %s648_s3, %s644_s27 }
  0x2f   : > { %v263_v5 = vsel %vm262_vm0, %v258_v2, -inf  ;;  %v270_v6 = vsel %vm262_vm0, %v259_v3, -inf }
  0x30   : > { %v264_v7 = vrot.slane %v263_v5, 4  ;;  %v271_v8 = vrot.slane %v270_v6, 4  ;;  %v483_v51 = vld [vmem:[%s836_s8 + $0x4] sm:$0xf]  ;;  %p646_p5 = pnand %p645_p4, %p786_p9  ;;  %p651_p10 = por %p650_p8, %p649_p7 }
  0x31   : > { %v249_v57 = vld [vmem:[%s836_s8] sm:$0xf] }
  0x32   : > { %v265_v9 = vmax.f32 %v263_v5, %v264_v7  ;;  %v272_v10 = vmax.f32 %v270_v6, %v271_v8  ;;  %v484_v28 = vld [vmem:[%s836_s8 + $0x8] sm:$0xf]  ;;  %p647_p6 = pneg %p646_p5 }
  0x33   : > { %v332_v32 = vadd.f32 %v484_v28, %v331_v27 }
  0x34   : > { %v266_v15 = vrot.slane %v265_v9, 2  ;;  %v273_v16 = vrot.slane %v272_v10, 2  ;;  %p652_p13 = pnand %p651_p10, %p647_p6 }
  0x35   : > { %490 = vst [vmem:[%s836_s8 + $0x8] sm:$0xf] %v332_v32 }
  0x36   : > { %v267_v19 = vmax.f32 %v265_v9, %v266_v15  ;;  %v274_v20 = vmax.f32 %v272_v10, %v273_v16 }
  0x38   : > { %v268_v21 = vrot.slane %v267_v19, 1  ;;  %v275_v22 = vrot.slane %v274_v20, 1 }
  0x3a   : > { %v276_v26 = vmax.f32 %v274_v20, %v275_v22  ;;  %v269_v29 = vmax.f32 %v267_v19, %v268_v21 }
  0x3c   : > { %v279_v30 = vrot.slane %v276_v26, 4 }
  0x3e   : > { %v280_v33 = vsel %vm262_vm0, %v269_v29, %v279_v30 }
  0x3f   : > { %vm282_vm3 = vcmp.eq.f32.partialorder %v254_v1, %v280_v33 }
  0x40   : > { %v287_v34 = vsel %vm282_vm3, %v286_v31, 4 }
  0x41   : > { %288 = vst [vmem:[#allocation1] ss:$2 sm:$0xff] %v287_v34 }
  0x48   : > { %v289_v35 = vld.sshfl [vmem:[#allocation1] sm:$0xff pattern:$0x75316420]  ;;  %v290_v36 = vld.sshfl [vmem:[#allocation1 + $0x8] sm:$0xff pattern:$0x75316420] }
  0x49   : > { %v291_v37 = vsel %vm262_vm0, %v289_v35, 2147483647  ;;  %v301_v38 = vsel %vm262_vm0, %v290_v36, 2147483647 }
  0x4a   : > { %v292_v39 = vrot.slane %v291_v37, 4  ;;  %v302_v40 = vrot.slane %v301_v38, 4 }
  0x4c   : > { %vm293_vm4 = vcmp.lt.s32.totalorder %v291_v37, %v292_v39  ;;  %vm303_vm5 = vcmp.lt.s32.totalorder %v301_v38, %v302_v40 }
  0x4d   : > { %v294_v41 = vsel %vm293_vm4, %v291_v37, %v292_v39  ;;  %v304_v42 = vsel %vm303_vm5, %v301_v38, %v302_v40 }
  0x4e   : > { %v295_v43 = vrot.slane %v294_v41, 2  ;;  %v305_v44 = vrot.slane %v304_v42, 2 }
  0x50   : > { %vm296_vm6 = vcmp.lt.s32.totalorder %v294_v41, %v295_v43  ;;  %vm306_vm7 = vcmp.lt.s32.totalorder %v304_v42, %v305_v44 }
  0x51   : > { %v297_v45 = vsel %vm296_vm6, %v294_v41, %v295_v43  ;;  %v307_v46 = vsel %vm306_vm7, %v304_v42, %v305_v44 }
  0x52   : > { %v298_v47 = vrot.slane %v297_v45, 1  ;;  %v308_v48 = vrot.slane %v307_v46, 1 }
  0x54   : > { %vm299_vm8 = vcmp.lt.s32.totalorder %v297_v45, %v298_v47  ;;  %vm309_vm9 = vcmp.lt.s32.totalorder %v307_v46, %v308_v48 }
  0x55   : > { %v300_v49 = vsel %vm299_vm8, %v297_v45, %v298_v47  ;;  %v310_v50 = vsel %vm309_vm9, %v307_v46, %v308_v48 }
  0x56   : > { %vm311_vm10 = vcmp.eq.s32.totalorder %v248_v11, %v300_v49  ;;  %vm312_vm11 = vcmp.eq.s32.totalorder %v248_v11, %v310_v50 }
  0x57   : > { %v485_v52 = vsel %vm311_vm10, 1.0, %v716_v0  ;;  %v486_v53 = vsel %vm312_vm11, 1.0, %v716_v0 }
  0x58   : > { %v329_v54 = vadd.f32 %v486_v53, %v485_v52  ;;  %v325_v55 = vmul.f32 %v487_v24, %v485_v52  ;;  %v326_v56 = vmul.f32 %v488_v25, %v486_v53 }
  0x5a   : > { %v330_v58 = vadd.f32 %v483_v51, %v329_v54  ;;  %v327_v59 = vadd.f32 %v326_v56, %v325_v55 }
  0x5c   : > { %489 = vst [vmem:[%s836_s8 + $0x4] sm:$0xf] %v330_v58  ;;  %v328_v60 = vadd.f32 %v327_v59, %v249_v57 }
  0x5e   : > { %333 = vst [vmem:[%s836_s8] sm:$0xf] %v328_v60 }
  0x5f   : > { %655 = shalt.err (!%p652_p13)
}
  0x60   : > { %s718_s29 = smov 64   ;;  %s719_s5 = smov 4  }
  0x61   : > { %501 = dma.vmem_to_hbm [thread:$0]  (%p786_p9), %s352_s12, 192, %s354_s20, %s337_s26, %s718_s29, %s718_s29, %s719_s5  }
  0x62 PF: > { %s368_s6 = sand.u32 1, %s694_s9   ;;  %p511_p0 = pnand %p474_p12, %p793_p11 }
  0x63   : > { %s369_s7 = scalar_lea.sflag [#allocation4], %s368_s6 }
  0x64   : > { %p512_p1 = pneg %p511_p0 }
  0x66   : > { %689 = dma.done.wait (%p512_p1), %s369_s7, 192  }
  0x67   : > { %691 = vsyncadd (%p512_p1), %s369_s7, 4294967104  ;;  %s21_s14 = sadd.s32 1, %s714_s14   ;;  %s906_s9 = smov %s698_s10 }
  0x68   : > { %p18_p2 = scmp.ge.s32.totalorder %s21_s14, 4   ;;  %s907_s10 = smov %s702_s11 }
  0x69   : > { %s908_s11 = smov %s791_s23  ;;  %s909_s12 = smov %s710_s13 }
  0x6a   : > { %s910_s13 = smov %s912_s17  ;;  %20 = sbr.rel (!%p18_p2) target bundleno = 8 (0x8), region = 92 }
  0x6f   :  { %375 = vsyncpa [#allocation3], 1 }
  0x70   :  { %377 = vsyncpa [#allocation3 + $0x1], 1 }
  0x71   :  { %378 = vsyncpa [#allocation6], 1 }
  0x72   :  { %380 = vsyncpa [#allocation6 + $0x1], 1 }
  0x73   :  { %381 = vsyncpa [#allocation4], 1 }
  0x74   :  { %383 = vsyncpa [#allocation4 + $0x1], 1 }

</bundles_post_ra>
